<compile_context>
chip_gen: v5e
topology: v5e:2x2
jax: 0.10.0
libtpu: 0.0.40
codegen_flags: <defaults>
</compile_context>

<pallas_src>
import functools

import jax
import jax.numpy as jnp
from jax import lax
from jax.experimental import pallas as pl
from jax.experimental.pallas import tpu as pltpu


# ----------------------------------------------------------------------------- kernel math
def _rms_rows(x_f32, eps, sub, d):
    """RMS-normalise each d-wide chunk of the lane axis independently.

    x_f32: (TB, sub*d) float32.  sub == 1 is the ordinary full-row case.
    """
    if sub == 1:
        ms = jnp.mean(x_f32 * x_f32, axis=-1, keepdims=True)
        return x_f32 * lax.rsqrt(ms + eps)
    parts = []
    for j in range(sub):  # sub is tiny (128 // head_dim); stays 2-D throughout
        c = x_f32[:, j * d:(j + 1) * d]
        ms = jnp.mean(c * c, axis=-1, keepdims=True)
        parts.append(c * lax.rsqrt(ms + eps))
    return jnp.concatenate(parts, axis=-1)


def _qknorm_fused_kernel(q_ref, k_ref, qo_ref, ko_ref, *, q_eps, k_eps, sub, d):
    # Finish q (load -> normalise -> store) before loading k: halves the peak
    # live f32 intermediates, which is what lets TB be large on v7x's 64 MiB VMEM.
    q = q_ref[...].astype(jnp.float32)
    qo_ref[...] = _rms_rows(q, q_eps, sub, d).astype(qo_ref.dtype)
    k = k_ref[...].astype(jnp.float32)
    ko_ref[...] = _rms_rows(k, k_eps, sub, d).astype(ko_ref.dtype)


def _rmsnorm_kernel(x_ref, o_ref, *, eps, sub, d):
    x = x_ref[...].astype(jnp.float32)
    o_ref[...] = _rms_rows(x, eps, sub, d).astype(o_ref.dtype)


# ----------------------------------------------------------------------------- tiling helpers
def _round_up(x, m):
    return -(-x // m) * m


def _sublane_multiple(*dtypes):
    """Row-block multiple honouring sublane packing of narrow dtypes."""
    m = 8
    for dt in dtypes:
        isz = jnp.dtype(dt).itemsize
        if isz <= 1:
            m = max(m, 32)
        elif isz == 2:
            m = max(m, 16)
    return m


def _lane_pack(n_rows, dim):
    """Fold `sub` rows into one 128-lane-wide row when possible (lane-dense I/O)."""
    if 0 < dim < 128 and 128 % dim == 0 and n_rows % (128 // dim) == 0:
        sub = 128 // dim
        return sub, n_rows // sub, sub * dim
    return 1, n_rows, dim


def _select_block_rows(n_rows, row_bytes, mult, *, block_budget_bytes=2 << 20):
    """Rows per block: ~block_budget bytes of HBM traffic per array per step,
    sublane-packed multiple, and an even (>=2) grid when there's enough work."""
    tb = max(mult, (block_budget_bytes // max(row_bytes, 1)) // mult * mult)
    steps = pl.cdiv(n_rows, tb)
    if steps < 2 and n_rows >= 2 * mult:
        steps = 2                      # give both v7x TensorCores something to do
    elif steps > 1 and steps % 2 == 1:
        steps += 1                     # even step count for 2-TC sharding
    tb = min(tb, _round_up(pl.cdiv(n_rows, steps), mult))
    if tb >= n_rows:
        return n_rows                  # single full-extent block (always legal)
    return tb


def _vmem_limit_bytes(tb, dim_p, io_itemsizes):
    io = 2 * tb * dim_p * sum(io_itemsizes)   # double-buffered I/O blocks
    temps = 4 * tb * dim_p * 4                # f32 intermediates (q/k serialized)
    est = int(1.25 * (io + temps))
    # Cap at 48 MiB: leaves headroom under v7x's 64 MiB physical VMEM while
    # lifting v5e/v6e above their 16/32 MiB scoped defaults.
    return max(32 << 20, min(est, 48 << 20))


# ----------------------------------------------------------------------------- wrappers
def _rmsnorm_lastdim(x, out_dtype, *, block_budget_bytes=2 << 20):
    """RMSNorm (no affine) over the last dim of an arbitrarily-shaped array."""
    orig_shape = x.shape
    dim = orig_shape[-1]
    n_rows = 1
    for s in orig_shape[:-1]:
        n_rows *= s

    sub, rows_p, dim_p = _lane_pack(n_rows, dim)
    x2 = x.reshape(rows_p, dim_p)

    mult = _sublane_multiple(x.dtype, out_dtype)
    row_bytes = dim_p * max(jnp.dtype(x.dtype).itemsize, jnp.dtype(out_dtype).itemsize)
    tb = _select_block_rows(rows_p, row_bytes, mult, block_budget_bytes=block_budget_bytes)
    grid = (pl.cdiv(rows_p, tb),)
    eps = float(jnp.finfo(x.dtype).eps)   # torch.nn.RMSNorm default eps

    spec = pl.BlockSpec((tb, dim_p), lambda i: (i, 0))
    out = pl.pallas_call(
        functools.partial(_rmsnorm_kernel, eps=eps, sub=sub, d=dim),
        out_shape=jax.ShapeDtypeStruct((rows_p, dim_p), out_dtype),
        grid=grid,
        in_specs=[spec],
        out_specs=spec,
        compiler_params=pltpu.CompilerParams(
            dimension_semantics=("parallel",),
            vmem_limit_bytes=_vmem_limit_bytes(
                tb, dim_p,
                [jnp.dtype(x.dtype).itemsize, jnp.dtype(out_dtype).itemsize])),
    )(x2)
    return out.reshape(orig_shape)


def qknorm(q, k, *, block_budget_bytes=2 << 20):
    """QKNorm.forward: (RMSNorm(q).astype(q.dtype), RMSNorm(k).astype(q.dtype))."""
    out_dtype = q.dtype

    if q.shape != k.shape:
        # Different q/k shapes (e.g. different seq lengths): two separate calls.
        return (_rmsnorm_lastdim(q, out_dtype, block_budget_bytes=block_budget_bytes),
                _rmsnorm_lastdim(k, out_dtype, block_budget_bytes=block_budget_bytes))

    orig_shape = q.shape
    dim = orig_shape[-1]
    n_rows = 1
    for s in orig_shape[:-1]:
        n_rows *= s

    sub, rows_p, dim_p = _lane_pack(n_rows, dim)
    q2 = q.reshape(rows_p, dim_p)
    k2 = k.reshape(rows_p, dim_p)

    q_isz = jnp.dtype(q.dtype).itemsize
    k_isz = jnp.dtype(k.dtype).itemsize
    o_isz = jnp.dtype(out_dtype).itemsize
    mult = _sublane_multiple(q.dtype, k.dtype, out_dtype)
    row_bytes = dim_p * max(q_isz, k_isz, o_isz)
    tb = _select_block_rows(rows_p, row_bytes, mult, block_budget_bytes=block_budget_bytes)
    grid = (pl.cdiv(rows_p, tb),)

    q_eps = float(jnp.finfo(q.dtype).eps)   # torch.nn.RMSNorm eps = finfo(input dtype).eps
    k_eps = float(jnp.finfo(k.dtype).eps)

    spec = pl.BlockSpec((tb, dim_p), lambda i: (i, 0))
    q_out, k_out = pl.pallas_call(
        functools.partial(_qknorm_fused_kernel, q_eps=q_eps, k_eps=k_eps, sub=sub, d=dim),
        out_shape=(jax.ShapeDtypeStruct((rows_p, dim_p), out_dtype),
                   jax.ShapeDtypeStruct((rows_p, dim_p), out_dtype)),
        grid=grid,
        in_specs=[spec, spec],
        out_specs=(spec, spec),
        compiler_params=pltpu.CompilerParams(
            dimension_semantics=("parallel",),
            vmem_limit_bytes=_vmem_limit_bytes(tb, dim_p, [q_isz, k_isz, o_isz, o_isz])),
    )(q2, k2)
    return q_out.reshape(orig_shape), k_out.reshape(orig_shape)


# ----------------------------------------------------------------------------- reference
def _ref_rmsnorm(x, eps):
    xf = x.astype(jnp.float32)
    ms = jnp.mean(xf * xf, axis=-1, keepdims=True)
    return xf * lax.rsqrt(ms + eps)


if __name__ == "__main__":
    key = jax.random.PRNGKey(0)
    kq, kk, kk2, kq3, kk3, kqb, kkb = jax.random.split(key, 7)

    # --- fused, lane-packed path: (batch, heads, seq, head_dim=64), f32 -------
    B, H, S, D = 2, 4, 8, 64
    q = jax.random.normal(kq, (B, H, S, D), dtype=jnp.float32)
    k = jax.random.normal(kk, (B, H, S, D), dtype=jnp.float32)

    q_out, k_out = qknorm(q, k)
    q_out, k_out = jax.block_until_ready((q_out, k_out))

    eps32 = float(jnp.finfo(jnp.float32).eps)
    q_ref = _ref_rmsnorm(q, eps32).astype(q.dtype)
    k_ref = _ref_rmsnorm(k, eps32).astype(q.dtype)
    assert q_out.shape == q.shape and k_out.shape == k.shape
    assert bool(jnp.all(jnp.isfinite(q_out))) and bool(jnp.all(jnp.isfinite(k_out)))
    assert bool(jnp.allclose(q_out, q_ref, rtol=1e-5, atol=1e-5))
    assert bool(jnp.allclose(k_out, k_ref, rtol=1e-5, atol=1e-5))

    # --- unfused fallback path (different kv sequence length) -----------------
    k_long = jax.random.normal(kk2, (B, H, 2 * S, D), dtype=jnp.float32)
    q_out2, k_out2 = qknorm(q, k_long)
    q_out2, k_out2 = jax.block_until_ready((q_out2, k_out2))
    assert bool(jnp.allclose(q_out2, q_ref, rtol=1e-5, atol=1e-5))
    assert bool(jnp.allclose(k_out2, _ref_rmsnorm(k_long, eps32).astype(q.dtype),
                             rtol=1e-5, atol=1e-5))

    # --- odd row count (no lane packing, ragged-safe path) --------------------
    q3 = jax.random.normal(kq3, (3, 5, D), dtype=jnp.float32)
    k3 = jax.random.normal(kk3, (3, 5, D), dtype=jnp.float32)
    q_out3, k_out3 = jax.block_until_ready(qknorm(q3, k3))
    assert bool(jnp.allclose(q_out3, _ref_rmsnorm(q3, eps32), rtol=1e-5, atol=1e-5))
    assert bool(jnp.allclose(k_out3, _ref_rmsnorm(k3, eps32), rtol=1e-5, atol=1e-5))

    # --- bf16, head_dim=128 (no packing, 16-row sublane multiple) -------------
    qb = jax.random.normal(kqb, (B, H, S, 128), dtype=jnp.bfloat16)
    kb = jax.random.normal(kkb, (B, H, S, 128), dtype=jnp.bfloat16)
    qb_out, kb_out = jax.block_until_ready(qknorm(qb, kb))
    eps_bf16 = float(jnp.finfo(jnp.bfloat16).eps)
    assert qb_out.dtype == jnp.bfloat16 and kb_out.dtype == jnp.bfloat16
    assert bool(jnp.allclose(qb_out.astype(jnp.float32), _ref_rmsnorm(qb, eps_bf16),
                             rtol=3e-2, atol=3e-2))
    assert bool(jnp.allclose(kb_out.astype(jnp.float32), _ref_rmsnorm(kb, eps_bf16),
                             rtol=3e-2, atol=3e-2))

    print("KERNEL_OK")
</pallas_src>

<mosaic_0001>
module attributes {stable_mosaic.version = 11 : i64} {
  func.func @_qknorm_fused_kernel(%arg0: i32, %arg1: memref<16x128xf32, #tpu.memory_space<vmem>>, %arg2: memref<16x128xf32, #tpu.memory_space<vmem>>, %arg3: memref<16x128xf32, #tpu.memory_space<vmem>>, %arg4: memref<16x128xf32, #tpu.memory_space<vmem>>) attributes {dimension_semantics = [#tpu.dimension_semantics<parallel>], iteration_bounds = array<i64: 2>, scalar_prefetch = 0 : i64, scratch_operands = 0 : i64, tpu.core_type = #tpu.core_type<tc>, window_params = [{transform_indices = @transform_0, window_bounds = array<i64: 16, 128>}, {transform_indices = @transform_1, window_bounds = array<i64: 16, 128>}, {transform_indices = @transform_2, window_bounds = array<i64: 16, 128>}, {transform_indices = @transform_3, window_bounds = array<i64: 16, 128>}]} {
    %c0 = arith.constant 0 : index
    %c0_0 = arith.constant 0 : index
    %0 = vector.load %arg1[%c0, %c0_0] : memref<16x128xf32, #tpu.memory_space<vmem>>, vector<16x128xf32>
    %1 = vector.extract_strided_slice %0 {offsets = [0, 0], sizes = [16, 64], strides = [1, 1]} : vector<16x128xf32> to vector<16x64xf32>
    %2 = arith.mulf %1, %1 : vector<16x64xf32>
    %cst = arith.constant dense<0.000000e+00> : vector<16xf32>
    %3 = vector.multi_reduction <add>, %2, %cst [1] : vector<16x64xf32> to vector<16xf32>
    %4 = vector.shape_cast %3 : vector<16xf32> to vector<16x1xf32>
    %cst_1 = arith.constant 6.400000e+01 : f32
    %5 = vector.broadcast %cst_1 : f32 to vector<16x1xf32>
    %6 = arith.divf %4, %5 : vector<16x1xf32>
    %cst_2 = arith.constant 1.1920929E-7 : f32
    %7 = vector.broadcast %cst_2 : f32 to vector<16x1xf32>
    %8 = arith.addf %6, %7 : vector<16x1xf32>
    %9 = math.rsqrt %8 : vector<16x1xf32>
    %10 = vector.broadcast %9 : vector<16x1xf32> to vector<16x64xf32>
    %11 = arith.mulf %1, %10 : vector<16x64xf32>
    %12 = vector.extract_strided_slice %0 {offsets = [0, 64], sizes = [16, 64], strides = [1, 1]} : vector<16x128xf32> to vector<16x64xf32>
    %13 = arith.mulf %12, %12 : vector<16x64xf32>
    %cst_3 = arith.constant dense<0.000000e+00> : vector<16xf32>
    %14 = vector.multi_reduction <add>, %13, %cst_3 [1] : vector<16x64xf32> to vector<16xf32>
    %15 = vector.shape_cast %14 : vector<16xf32> to vector<16x1xf32>
    %cst_4 = arith.constant 6.400000e+01 : f32
    %16 = vector.broadcast %cst_4 : f32 to vector<16x1xf32>
    %17 = arith.divf %15, %16 : vector<16x1xf32>
    %cst_5 = arith.constant 1.1920929E-7 : f32
    %18 = vector.broadcast %cst_5 : f32 to vector<16x1xf32>
    %19 = arith.addf %17, %18 : vector<16x1xf32>
    %20 = math.rsqrt %19 : vector<16x1xf32>
    %21 = vector.broadcast %20 : vector<16x1xf32> to vector<16x64xf32>
    %22 = arith.mulf %12, %21 : vector<16x64xf32>
    %23 = tpu.concatenate %11, %22 in 1 : vector<16x64xf32>, vector<16x64xf32> -> vector<16x128xf32>
    %c0_6 = arith.constant 0 : index
    %c0_7 = arith.constant 0 : index
    %24 = vector.load %arg3[%c0_6, %c0_7] : memref<16x128xf32, #tpu.memory_space<vmem>>, vector<16x128xf32>
    tpu.vector_store %arg3[%c0_6, %c0_7], %23 {strides = array<i32>} : memref<16x128xf32, #tpu.memory_space<vmem>>, vector<16x128xf32>,
    %c0_8 = arith.constant 0 : index
    %c0_9 = arith.constant 0 : index
    %25 = vector.load %arg2[%c0_8, %c0_9] : memref<16x128xf32, #tpu.memory_space<vmem>>, vector<16x128xf32>
    %26 = vector.extract_strided_slice %25 {offsets = [0, 0], sizes = [16, 64], strides = [1, 1]} : vector<16x128xf32> to vector<16x64xf32>
    %27 = arith.mulf %26, %26 : vector<16x64xf32>
    %cst_10 = arith.constant dense<0.000000e+00> : vector<16xf32>
    %28 = vector.multi_reduction <add>, %27, %cst_10 [1] : vector<16x64xf32> to vector<16xf32>
    %29 = vector.shape_cast %28 : vector<16xf32> to vector<16x1xf32>
    %cst_11 = arith.constant 6.400000e+01 : f32
    %30 = vector.broadcast %cst_11 : f32 to vector<16x1xf32>
    %31 = arith.divf %29, %30 : vector<16x1xf32>
    %cst_12 = arith.constant 1.1920929E-7 : f32
    %32 = vector.broadcast %cst_12 : f32 to vector<16x1xf32>
    %33 = arith.addf %31, %32 : vector<16x1xf32>
    %34 = math.rsqrt %33 : vector<16x1xf32>
    %35 = vector.broadcast %34 : vector<16x1xf32> to vector<16x64xf32>
    %36 = arith.mulf %26, %35 : vector<16x64xf32>
    %37 = vector.extract_strided_slice %25 {offsets = [0, 64], sizes = [16, 64], strides = [1, 1]} : vector<16x128xf32> to vector<16x64xf32>
    %38 = arith.mulf %37, %37 : vector<16x64xf32>
    %cst_13 = arith.constant dense<0.000000e+00> : vector<16xf32>
    %39 = vector.multi_reduction <add>, %38, %cst_13 [1] : vector<16x64xf32> to vector<16xf32>
    %40 = vector.shape_cast %39 : vector<16xf32> to vector<16x1xf32>
    %cst_14 = arith.constant 6.400000e+01 : f32
    %41 = vector.broadcast %cst_14 : f32 to vector<16x1xf32>
    %42 = arith.divf %40, %41 : vector<16x1xf32>
    %cst_15 = arith.constant 1.1920929E-7 : f32
    %43 = vector.broadcast %cst_15 : f32 to vector<16x1xf32>
    %44 = arith.addf %42, %43 : vector<16x1xf32>
    %45 = math.rsqrt %44 : vector<16x1xf32>
    %46 = vector.broadcast %45 : vector<16x1xf32> to vector<16x64xf32>
    %47 = arith.mulf %37, %46 : vector<16x64xf32>
    %48 = tpu.concatenate %36, %47 in 1 : vector<16x64xf32>, vector<16x64xf32> -> vector<16x128xf32>
    %c0_16 = arith.constant 0 : index
    %c0_17 = arith.constant 0 : index
    %49 = vector.load %arg4[%c0_16, %c0_17] : memref<16x128xf32, #tpu.memory_space<vmem>>, vector<16x128xf32>
    tpu.vector_store %arg4[%c0_16, %c0_17], %48 {strides = array<i32>} : memref<16x128xf32, #tpu.memory_space<vmem>>, vector<16x128xf32>,
    return
  }
  func.func @transform_0(%arg0: i32) -> (i32, i32) {
    %c0_i32 = arith.constant 0 : i32
    %c0_i32_0 = arith.constant 0 : i32
    return %arg0, %c0_i32 : i32, i32
  }
  func.func @transform_1(%arg0: i32) -> (i32, i32) {
    %c0_i32 = arith.constant 0 : i32
    %c0_i32_0 = arith.constant 0 : i32
    return %arg0, %c0_i32 : i32, i32
  }
  func.func @transform_2(%arg0: i32) -> (i32, i32) {
    %c0_i32 = arith.constant 0 : i32
    %c0_i32_0 = arith.constant 0 : i32
    return %arg0, %c0_i32 : i32, i32
  }
  func.func @transform_3(%arg0: i32) -> (i32, i32) {
    %c0_i32 = arith.constant 0 : i32
    %c0_i32_0 = arith.constant 0 : i32
    return %arg0, %c0_i32 : i32, i32
  }
}

</mosaic_0001>

<bundles_post_ra>
// kernel: tpu_custom_call.1
= control target key start
LH: loop header
LB: loop body
LE: loop exit
PB: predicated region body
PF: predicated region fallthrough
CT: control target
= control target key end

     0   :  { %s1210_s0 = inlined_call_operand.hbm [shape: f32[32,128], index: 0, kind: input, shape index: {}]   ;;  %s1211_s1 = inlined_call_operand.hbm [shape: f32[32,128], index: 1, kind: input, shape index: {}]   ;;  %s1212_s2 = inlined_call_operand.hbm [shape: f32[32,128], index: 2, kind: output, shape index: {0}]   ;;  %s1213_s3 = inlined_call_operand.hbm [shape: f32[32,128], index: 3, kind: output, shape index: {1}]  }
   0x1   :  { %1214 = sst [smem:[#allocation14_spill]] %s1210_s0 }
   0x2   :  { %9 = vsyncpa [#allocation3], 0 }
   0x3   :  { %11 = vsyncpa [#allocation3 + $0x1], 0 }
   0x4   :  { %12 = vsyncpa [#allocation6], 0 }
   0x5   :  { %14 = vsyncpa [#allocation6 + $0x1], 0 }
   0x6   :  { %15 = vsyncpa [#allocation4], 0 }
   0x7   :  { %17 = vsyncpa [#allocation4 + $0x1], 0 }
   0x8   :  { %18 = vsyncpa [#allocation9], 0 }
   0x9   :  { %20 = vsyncpa [#allocation9 + $0x1], 0  ;;  %s879_s12 = smov 0   ;;  %s881_s13 = smov 0  }
   0xa   :  { %s883_s14 = smov 0   ;;  %s885_s15 = smov 0  }
   0xb LB: > { %s900_s16 = sadd.s32 4294967295, %s851_s15   ;;  %s583_s17 = sadd.s32 4294967294, %s851_s15   ;;  %s851_s15 = sphi %s885_s15, %s1234_s15   ;;  %s847_s14 = sphi %s883_s14, %s1233_s14   ;;  %s843_s13 = sphi %s881_s13, %s1232_s13   ;;  %s839_s12 = sphi %s879_s12, %s1231_s12  }
   0xc   : > { %s904_s18 = sadd.s32 1, %s851_s15   ;;  %s33_s19 = sadd.s32 1, %s847_s14 }
   0xd   : > { %s30_s20 = ssub.s32 %s851_s15, %s904_s18  ;;  %p40_p0 = scmp.ne.s32.totalorder %s847_s14, %s843_s13 }
   0xe   : > { %p31_p1 = scmp.eq.s32.totalorder %s30_s20, 0  ;;  %p41_p2 = scmp.eq.s32.totalorder %s851_s15, 0 }
   0xf   : > { %p46_p3 = scmp.ne.s32.totalorder %s843_s13, %s839_s12  ;;  %p47_p4 = scmp.eq.s32.totalorder %s900_s16, 0 }
  0x10   : > { %s916_s21 = scalar_select %p31_p1, %s847_s14, %s33_s19  }
  0x11   : > { %p918_p5 = por %p41_p2, %p40_p0  ;;  %p922_p6 = por %p47_p4, %p46_p3 }
  0x12   : > { %p96_p7 = scmp.eq.s32.totalorder %s900_s16, 1  ;;  %p102_p8 = scmp.eq.s32.totalorder %s583_s17, 1 }
  0x13   : > { %p631_p10 = scmp.lt.s32.totalorder %s851_s15, 2  ;;  %s938_s26 = sand.u32 1, %s847_s14  }
  0x14   : > { %p929_p11 = por %p96_p7, %p40_p0  ;;  %p933_p12 = por %p102_p8, %p46_p3 }
  0x15   : > { %s605_s27 = sshll.u32 %s851_s15, 4  ;;  %s586_s28 = sshll.u32 %s938_s26, 4 }
  0x16   : > { %s1219_s0 = sld [smem:[#allocation14_spill]]  ;;  %s152_s6 = scalar_lea.vmem [#allocation2], %s586_s28 }
  0x17   : > { %s160_s7 = sshll.u32 %s152_s6, 4  ;;  %p951_p13 = pnand %p631_p10, %p918_p5  ;;  %s161_s7 = int_to_ptr.vmem [resolvable:$true] %s160_s7 }
  0x18   : > { %p592_p0 = scmp.ge.s32.totalorder %s851_s15, 1  ;;  %p190_p1 = scmp.lt.s32.totalorder %s851_s15, 3 }
  0x19   : > { %s149_s9 = scalar_lea.sflag [#allocation3], %s938_s26  ;;  %p693_p3 = pneg %p951_p13 }
  0x1c   : > { %s157_s4 = scalar_lea.hbm %s1219_s0, %s605_s27  ;;  %s696_s20 = scalar_lea.hbm %s1219_s0, 32 }
  0x1d   : > { %s158_s5 = sshll.u32 %s157_s4, 4  ;;  %s159_s5 = int_to_ptr.hbm [resolvable:$true] %s158_s5 }
  0x1e   : > { %s689_s10 = sshra.s32 %s159_s5, 4  ;;  %s690_s10 = int_to_ptr.hbm [resolvable:$true] %s689_s10 }
  0x1f   : > { %s691_s11 = scalar_lea.hbm %s690_s10, 16  ;;  %p697_p5 = scmp.lt.s32.totalorder %s690_s10, %s1219_s0 }
  0x20   : > { %p692_p2 = scmp.ne.s32.totalorder %s690_s10, %s691_s11  ;;  %p698_p8 = scmp.lt.s32.totalorder %s696_s20, %s691_s11 }
  0x22   : > { %p694_p4 = pnand %p693_p3, %p692_p2  ;;  %p699_p10 = por %p698_p8, %p697_p5 }
  0x24   : > { %p695_p7 = pneg %p694_p4 }
  0x26   : > { %p700_p9 = pnand %p699_p10, %p695_p7 }
  0x28   : > { %703 = shalt.err (!%p700_p9)
}
  0x29   : > { %s853_s30 = smov 128   ;;  %s854_s4 = smov 8  }
  0x2a   : > { %620 = dma.hbm_to_vmem [thread:$0]  (!%p951_p13), %s159_s5, 256, %s161_s7, %s149_s9, %s853_s30, %s853_s30, %s854_s4  }
  0x2b   : > { %p975_p2 = pnand %p592_p0, %p190_p1  ;;  %s179_s17 = scalar_lea.hbm %s1211_s1, %s605_s27 }
  0x2c   : > { %s180_s19 = sshll.u32 %s179_s17, 4  ;;  %s174_s20 = scalar_lea.vmem [#allocation5], %s586_s28  ;;  %s181_s19 = int_to_ptr.hbm [resolvable:$true] %s180_s19 }
  0x2d   : > { %s182_s22 = sshll.u32 %s174_s20, 4  ;;  %s171_s29 = scalar_lea.sflag [#allocation6], %s938_s26  ;;  %s183_s22 = int_to_ptr.vmem [resolvable:$true] %s182_s22 }
  0x2e   : > { %s719_s0 = sshra.s32 %s181_s19, 4  ;;  %s726_s10 = scalar_lea.hbm %s1211_s1, 32  ;;  %s720_s0 = int_to_ptr.hbm [resolvable:$true] %s719_s0 }
  0x2f   : > { %s721_s5 = scalar_lea.hbm %s720_s0, 16  ;;  %p727_p4 = scmp.lt.s32.totalorder %s720_s0, %s1211_s1 }
  0x30   : > { %p722_p9 = scmp.ne.s32.totalorder %s720_s0, %s721_s5  ;;  %p728_p7 = scmp.lt.s32.totalorder %s726_s10, %s721_s5 }
  0x32   : > { %p724_p0 = pnand %p722_p9, %p693_p3  ;;  %p729_p5 = por %p728_p7, %p727_p4 }
  0x34   : > { %p725_p1 = pneg %p724_p0 }
  0x36   : > { %p730_p8 = pnand %p729_p5, %p725_p1 }
  0x38   : > { %733 = shalt.err (!%p730_p8)
}
  0x39   : > { %623 = dma.hbm_to_vmem [thread:$0]  (!%p951_p13), %s181_s19, 256, %s183_s22, %s171_s29, %s853_s30, %s853_s30, %s854_s4  }
  0x3a   : > { %194 = sbr.rel (%p975_p2) target bundleno = 351 (0x15f), region = 28  ;;  %s1001_s26 = sand.u32 (!%p975_p2), 1, %s843_s13  }
  0x3b   : > { %s1004_s28 = sshll.u32 (!%p975_p2), %s1001_s26, 4  ;;  %s197_s0 = scalar_lea.sflag (!%p975_p2), [#allocation3], %s1001_s26 }
  0x3c   : > { %s200_s17 = scalar_lea.vmem (!%p975_p2), [#allocation2], %s1004_s28 }
  0x3f   : > { %822 = dma.done.wait (%p922_p6), %s197_s0, 256  }
  0x40   : > { %824 = vsyncadd (%p922_p6), %s197_s0, 4294967040  ;;  %s207_s8 = scalar_lea.sflag [#allocation6], %s1001_s26  ;;  %s210_s30 = scalar_lea.vmem [#allocation5], %s1004_s28 }
  0x41   : > { %826 = dma.done.wait (%p922_p6), %s207_s8, 256  }
  0x42   : > { %828 = vsyncadd (%p922_p6), %s207_s8, 4294967040  ;;  %v1018_v0 = vld [vmem:[%s210_s30] sm:$0xff]  ;;  %vm252_vm0 = vcmask 523264   ;;  %s855_s4 = smov 64   ;;  %v1027_v5 = vld [vmem:[%s210_s30 + $0x8] sm:$0xff]  ;;  %v856_v20 = vmov 64.0  }
  0x43   : > { %v1020_v1 = vld [vmem:[%s200_s17] sm:$0xff]  ;;  %v338_v2 = vmul.f32 %v1018_v0, %v1018_v0  ;;  %v1029_v6 = vld [vmem:[%s200_s17 + $0x8] sm:$0xff]  ;;  %v339_v7 = vmul.f32 %v1027_v5, %v1027_v5  ;;  %671 = vrcp.f32 %v856_v20  ;;  %s607_s23 = sshll.u32 %s900_s16, 4  ;;  %s236_s22 = scalar_lea.vmem [#allocation7], %s1004_s28 }
  0x44   : > { %v250_v3 = vmul.f32 %v1020_v1, %v1020_v1  ;;  %v251_v8 = vmul.f32 %v1029_v6, %v1029_v6  ;;  %s433_s20 = scalar_lea.hbm %s1212_s2, %s607_s23  ;;  %s434_s29 = sshll.u32 %s236_s22, 4  ;;  %s1148_s29 = int_to_ptr.vmem [resolvable:$true] %s434_s29 }
  0x45   : > { %374 = vrot.lane.b32.xlu1 %v338_v2, %s855_s4  ;;  %v340_v10 = vsel %vm252_vm0, %v338_v2, 0.0  ;;  %v343_v11 = vsel %vm252_vm0, %v339_v7, 0.0  ;;  %s436_s5 = sshll.u32 %s433_s20, 4  ;;  %s1132_s7 = scalar_lea.vmem [#allocation8], %s1004_s28  ;;  %s1150_s5 = int_to_ptr.hbm [resolvable:$true] %s436_s5 }
  0x46   : > { %294 = vrot.lane.b32.xlu0 %v250_v3, %s855_s4  ;;  %v253_v4 = vsel %vm252_vm0, %v250_v3, 0.0  ;;  %v256_v9 = vsel %vm252_vm0, %v251_v8, 0.0  ;;  %s450_s27 = scalar_lea.hbm %s1213_s3, %s607_s23  ;;  %s451_s16 = sshll.u32 %s1132_s7, 4  ;;  %s1159_s16 = int_to_ptr.vmem [resolvable:$true] %s451_s16 }
  0x47   : > { %254 = vadd.xlane.f32.xlu2 %v253_v4  ;;  %s453_s11 = sshll.u32 %s450_s27, 4  ;;  %s417_s28 = scalar_lea.sflag [#allocation4], %s1001_s26  ;;  %s1161_s11 = int_to_ptr.hbm [resolvable:$true] %s453_s11 }
  0x48   : > { %s763_s0 = sshra.s32 %s1150_s5, 4  ;;  %s764_s0 = int_to_ptr.hbm [resolvable:$true] %s763_s0 }
  0x49   : > { %v672_v22 = vpop.eup %671  ;;  %s765_s17 = scalar_lea.hbm %s764_s0, 16  ;;  %p770_p10 = scmp.lt.s32.totalorder %s764_s0, %s1212_s2 }
  0x4a   : > { %v260_v23 = vmul.f32 64.0, %v672_v22  ;;  %vm264_vm1 = vweird.f32 %v672_v22  ;;  %p766_p6 = scmp.ne.s32.totalorder %s764_s0, %s765_s17 }
  0x4c   : > { %v261_v24 = vsub.f32 1.0, %v260_v23  ;;  %p767_p13 = pnand %p766_p6, %p929_p11 }
  0x4d   : > { %376 = vrot.lane.b32.xlu1 %v339_v7, %s855_s4 }
  0x4e   : > { %296 = vrot.lane.b32.xlu0 %v251_v8, %s855_s4  ;;  %v262_v26 = vmul.f32 %v672_v22, %v261_v24  ;;  %p768_p3 = pneg %p767_p13  ;;  %s769_s4 = scalar_lea.hbm %s1212_s2, 32 }
  0x4f   : > { %257 = vadd.xlane.f32.xlu2 %v256_v9  ;;  %p771_p2 = scmp.lt.s32.totalorder %s769_s4, %s765_s17 }
  0x50   : > { %v263_v27 = vadd.f32 %v672_v22, %v262_v26 }
  0x51   : > { %p772_p9 = por %p771_p2, %p770_p10 }
  0x52   : > { %v265_v28 = vsel %vm264_vm1, %v672_v22, %v263_v27 }
  0x53   : > { %p773_p0 = pnand %p772_p9, %p768_p3 }
  0x57   : > { %341 = vadd.xlane.f32.xlu2 %v340_v10 }
  0x5f   : > { %344 = vadd.xlane.f32.xlu2 %v343_v11 }
  0xb7   : > { %v375_v12 = vpop.permute.xlu1 %374 }
  0xb8   : > { %v295_v13 = vpop.permute.xlu0 %294  ;;  %v380_v15 = vsel %vm252_vm0, %v375_v12, 0.0 }
  0xb9   : > { %v300_v14 = vsel %vm252_vm0, %v295_v13, 0.0  ;;  %381 = vadd.xlane.f32.xlu2 %v380_v15 }
  0xba   : > { %301 = vadd.xlane.f32.xlu0 %v300_v14  ;;  %v255_v21 = vpop.xlane.xlu2 %254 }
  0xbb   : > { %v266_v30 = vmul.f32 %v265_v28, %v255_v21 }
  0xbd   : > { %v268_v32 = vadd.f32 1.1920929e-07, %v266_v30 }
  0xbf   : > { %v377_v16 = vpop.permute.xlu1 %376  ;;  %673 = vrsqrt.f32 %v268_v32  ;;  %vm276_vm2 = vweird.f32 %v268_v32 }
  0xc0   : > { %v297_v17 = vpop.permute.xlu0 %296  ;;  %v383_v19 = vsel %vm252_vm0, %v377_v16, 0.0 }
  0xc1   : > { %v303_v18 = vsel %vm252_vm0, %v297_v17, 0.0  ;;  %384 = vadd.xlane.f32.xlu2 %v383_v19 }
  0xc2   : > { %304 = vadd.xlane.f32.xlu1 %v303_v18  ;;  %v258_v25 = vpop.xlane.xlu2 %257 }
  0xc3   : > { %v267_v35 = vmul.f32 %v265_v28, %v258_v25 }
  0xc5   : > { %v1042_v37 = vadd.f32 1.1920929e-07, %v267_v35  ;;  %v1044_v38 = vpop.eup %673 }
  0xc6   : > { %v271_v41 = vmul.f32 %v1044_v38, %v268_v32  ;;  %vm277_vm3 = vweird.f32 %v1044_v38 }
  0xc7   : > { %vm1079_vm6 = vmor %vm276_vm2, %vm277_vm3  ;;  %vm286_vm8 = vweird.f32 %v1042_v37 }
  0xc8   : > { %v272_v47 = vmul.f32 %v1044_v38, %v271_v41 }
  0xca   : > { %v342_v29 = vpop.xlane.xlu2 %341  ;;  %v273_v53 = vmul.f32 0.5, %v272_v47 }
  0xcb   : > { %v346_v31 = vmul.f32 %v342_v29, %v265_v28 }
  0xcc   : > { %v274_v62 = vsub.f32 1.5, %v273_v53 }
  0xcd   : > { %v348_v33 = vadd.f32 1.1920929e-07, %v346_v31 }
  0xce   : > { %v275_v12 = vmul.f32 %v1044_v38, %v274_v62 }
  0xcf   : > { %675 = vrsqrt.f32 %v348_v33  ;;  %vm356_vm4 = vweird.f32 %v348_v33 }
  0xd0   : > { %677 = vrsqrt.f32 %v1042_v37  ;;  %v279_v23 = vsel %vm1079_vm6, %v1044_v38, %v275_v12 }
  0xd2   : > { %v345_v34 = vpop.xlane.xlu2 %344 }
  0xd3   : > { %v347_v36 = vmul.f32 %v345_v34, %v265_v28 }
  0xd5   : > { %v1046_v39 = vadd.f32 1.1920929e-07, %v347_v36  ;;  %v1048_v40 = vpop.eup %675 }
  0xd6   : > { %v351_v42 = vmul.f32 %v1048_v40, %v348_v33  ;;  %v1057_v50 = vpop.eup %677  ;;  %vm357_vm5 = vweird.f32 %v1048_v40  ;;  %v290_v33 = vmul.f32 %v279_v23, %v1020_v1 }
  0xd7   : > { %679 = vrsqrt.f32 %v1046_v39  ;;  %v281_v54 = vmul.f32 %v1057_v50, %v1042_v37  ;;  %vm1084_vm7 = vmor %vm356_vm4, %vm357_vm5  ;;  %vm287_vm9 = vweird.f32 %v1057_v50  ;;  %vm366_vm15 = vweird.f32 %v1046_v39 }
  0xd8   : > { %v352_v51 = vmul.f32 %v1048_v40, %v351_v42  ;;  %vm1117_vm3 = vmor %vm286_vm8, %vm287_vm9 }
  0xd9   : > { %v282_v63 = vmul.f32 %v1057_v50, %v281_v54 }
  0xda   : > { %v353_v55 = vmul.f32 0.5, %v352_v51 }
  0xdb   : > { %v283_v13 = vmul.f32 0.5, %v282_v63 }
  0xdc   : > { %v354_v7 = vsub.f32 1.5, %v353_v55 }
  0xdd   : > { %v1060_v52 = vpop.eup %679  ;;  %v284_v24 = vsub.f32 1.5, %v283_v13 }
  0xde   : > { %v361_v58 = vmul.f32 %v1060_v52, %v1046_v39  ;;  %v355_v16 = vmul.f32 %v1048_v40, %v354_v7  ;;  %vm367_vm2 = vweird.f32 %v1060_v52 }
  0xdf   : > { %v285_v41 = vmul.f32 %v1057_v50, %v284_v24  ;;  %vm1125_vm4 = vmor %vm366_vm15, %vm367_vm2 }
  0xe0   : > { %v362_v9 = vmul.f32 %v1060_v52, %v361_v58  ;;  %v359_v27 = vsel %vm1084_vm7, %v1048_v40, %v355_v16 }
  0xe1   : > { %v370_v42 = vmul.f32 %v359_v27, %v1018_v0  ;;  %v289_v39 = vsel %vm1117_vm3, %v1057_v50, %v285_v41 }
  0xe2   : > { %v363_v19 = vmul.f32 0.5, %v362_v9  ;;  %v291_v50 = vmul.f32 %v289_v39, %v1029_v6 }
  0xe4   : > { %v364_v30 = vsub.f32 1.5, %v363_v19 }
 0x12c   : > { %v382_v44 = vpop.xlane.xlu2 %381 }
 0x12d   : > { %v302_v43 = vpop.xlane.xlu0 %301  ;;  %v386_v46 = vmul.f32 %v382_v44, %v265_v28 }
 0x12e   : > { %v306_v45 = vmul.f32 %v302_v43, %v265_v28 }
 0x12f   : > { %v1055_v49 = vadd.f32 1.1920929e-07, %v386_v46 }
 0x130   : > { %v308_v48 = vadd.f32 1.1920929e-07, %v306_v45  ;;  %v365_v45 = vmul.f32 %v1060_v52, %v364_v30 }
 0x131   : > { %vm396_vm14 = vweird.f32 %v1055_v49 }
 0x132   : > { %681 = vrsqrt.f32 %v308_v48  ;;  %vm316_vm12 = vweird.f32 %v308_v48  ;;  %v369_v53 = vsel %vm1125_vm4, %v1060_v52, %v365_v45 }
 0x133   : > { %683 = vrsqrt.f32 %v1055_v49  ;;  %v371_v52 = vmul.f32 %v369_v53, %v1027_v5 }
 0x134   : > { %v385_v57 = vpop.xlane.xlu2 %384 }
 0x135   : > { %v305_v56 = vpop.xlane.xlu1 %304  ;;  %v387_v60 = vmul.f32 %v385_v57, %v265_v28 }
 0x136   : > { %v307_v59 = vmul.f32 %v305_v56, %v265_v28 }
 0x137   : > { %v1070_v3 = vadd.f32 1.1920929e-07, %v387_v60 }
 0x138   : > { %v682_v61 = vpop.eup %681  ;;  %v1068_v2 = vadd.f32 1.1920929e-07, %v307_v59 }
 0x139   : > { %v684_v4 = vpop.eup %683  ;;  %v311_v8 = vmul.f32 %v682_v61, %v308_v48  ;;  %vm317_vm10 = vweird.f32 %v682_v61  ;;  %vm406_vm9 = vweird.f32 %v1070_v3 }
 0x13a   : > { %v391_v10 = vmul.f32 %v684_v4, %v1055_v49  ;;  %685 = vrsqrt.f32 %v1068_v2  ;;  %vm397_vm11 = vweird.f32 %v684_v4  ;;  %vm318_vm13 = vmor %vm316_vm12, %vm317_vm10  ;;  %vm326_vm7 = vweird.f32 %v1068_v2 }
 0x13b   : > { %v312_v11 = vmul.f32 %v682_v61, %v311_v8  ;;  %687 = vrsqrt.f32 %v1070_v3  ;;  %vm398_vm1 = vmor %vm396_vm14, %vm397_vm11 }
 0x13c   : > { %v392_v14 = vmul.f32 %v684_v4, %v391_v10 }
 0x13d   : > { %v313_v17 = vmul.f32 0.5, %v312_v11 }
 0x13e   : > { %v393_v20 = vmul.f32 0.5, %v392_v14 }
 0x13f   : > { %v314_v21 = vsub.f32 1.5, %v313_v17 }
 0x140   : > { %v686_v22 = vpop.eup %685  ;;  %v394_v25 = vsub.f32 1.5, %v393_v20 }
 0x141   : > { %v688_v26 = vpop.eup %687  ;;  %v315_v28 = vmul.f32 %v682_v61, %v314_v21  ;;  %v321_v29 = vmul.f32 %v686_v22, %v1068_v2  ;;  %vm327_vm5 = vweird.f32 %v686_v22 }
 0x142   : > { %v395_v31 = vmul.f32 %v684_v4, %v394_v25  ;;  %v401_v32 = vmul.f32 %v688_v26, %v1070_v3  ;;  %vm407_vm6 = vweird.f32 %v688_v26  ;;  %vm328_vm8 = vmor %vm326_vm7, %vm327_vm5 }
 0x143   : > { %v319_v34 = vsel %vm318_vm13, %v682_v61, %v315_v28  ;;  %v322_v35 = vmul.f32 %v686_v22, %v321_v29  ;;  %vm408_vm10 = vmor %vm406_vm9, %vm407_vm6 }
 0x144   : > { %v330_v36 = vmul.f32 %v319_v34, %v1020_v1  ;;  %v399_v38 = vsel %vm398_vm1, %v684_v4, %v395_v31  ;;  %v402_v40 = vmul.f32 %v688_v26, %v401_v32 }
 0x145   : > { %v410_v43 = vmul.f32 %v399_v38, %v1018_v0  ;;  %v323_v44 = vmul.f32 0.5, %v322_v35 }
 0x146   : > { %v332_v46 = vsel %vm252_vm0, %v290_v33, %v330_v36  ;;  %v403_v0 = vmul.f32 0.5, %v402_v40 }
 0x147   : > { %v412_v48 = vsel %vm252_vm0, %v370_v42, %v410_v43  ;;  %v324_v49 = vsub.f32 1.5, %v323_v44  ;;  %334 = vst [vmem:[%s236_s22] sm:$0xff] %v332_v46 }
 0x148   : > { %v404_v37 = vsub.f32 1.5, %v403_v0  ;;  %414 = vst [vmem:[%s1132_s7] sm:$0xff] %v412_v48 }
 0x149   : > { %v325_v51 = vmul.f32 %v686_v22, %v324_v49 }
 0x14a   : > { %v405_v54 = vmul.f32 %v688_v26, %v404_v37 }
 0x14b   : > { %v329_v55 = vsel %vm328_vm8, %v686_v22, %v325_v51 }
 0x14c   : > { %v331_v56 = vmul.f32 %v329_v55, %v1029_v6  ;;  %v409_v57 = vsel %vm408_vm10, %v688_v26, %v405_v54 }
 0x14d   : > { %v411_v58 = vmul.f32 %v409_v57, %v1027_v5 }
 0x14e   : > { %v333_v59 = vsel %vm252_vm0, %v291_v50, %v331_v56 }
 0x14f   : > { %v413_v60 = vsel %vm252_vm0, %v371_v52, %v411_v58  ;;  %335 = vst [vmem:[%s236_s22 + $0x8] sm:$0xff] %v333_v59 }
 0x150   : > { %776 = shalt.err (!%p773_p0)
}
 0x151   : > { %s857_s19 = smov 128   ;;  %s858_s20 = smov 8   ;;  %415 = vst [vmem:[%s1132_s7 + $0x8] sm:$0xff] %v413_v60 }
 0x152   : > { %613 = dma.vmem_to_hbm [thread:$0]  (%p929_p11), %s1148_s29, 256, %s1150_s5, %s417_s28, %s857_s19, %s857_s19, %s858_s20  }
 0x153   : > { %s422_s22 = scalar_lea.sflag [#allocation9], %s1001_s26  ;;  %s791_s9 = sshra.s32 %s1161_s11, 4  ;;  %s792_s9 = int_to_ptr.hbm [resolvable:$true] %s791_s9 }
 0x154   : > { %s793_s10 = scalar_lea.hbm %s792_s9, 16  ;;  %s797_s17 = scalar_lea.hbm %s1213_s3, 32 }
 0x155   : > { %p794_p1 = scmp.ne.s32.totalorder %s792_s9, %s793_s10  ;;  %p798_p5 = scmp.lt.s32.totalorder %s792_s9, %s1213_s3 }
 0x156   : > { %p799_p8 = scmp.lt.s32.totalorder %s797_s17, %s793_s10 }
 0x157   : > { %p795_p4 = pnand %p794_p1, %p929_p11 }
 0x158   : > { %p800_p6 = por %p799_p8, %p798_p5 }
 0x159   : > { %p796_p7 = pneg %p795_p4 }
 0x15b   : > { %p801_p13 = pnand %p800_p6, %p796_p7 }
 0x15d   : > { %804 = shalt.err (!%p801_p13)
}
 0x15e   : > { %614 = dma.vmem_to_hbm [thread:$0]  (%p929_p11), %s1159_s16, 256, %s1161_s11, %s422_s22, %s857_s19, %s857_s19, %s858_s20  }
 0x15f PF: > { %s468_s26 = sand.u32 1, %s839_s12   ;;  %p1230_p3 = scmp.ge.s32.totalorder %s851_s15, 2 }
 0x160   : > { %s469_s29 = scalar_lea.sflag [#allocation4], %s468_s26 }
 0x161   : > { %p625_p10 = pnand %p1230_p3, %p933_p12 }
 0x163   : > { %p626_p2 = pneg %p625_p10 }
 0x165   : > { %830 = dma.done.wait (%p626_p2), %s469_s29, 256  }
 0x166   : > { %832 = vsyncadd (%p626_p2), %s469_s29, 4294967040  ;;  %s479_s5 = scalar_lea.sflag [#allocation9], %s468_s26 }
 0x167   : > { %834 = dma.done.wait (%p626_p2), %s479_s5, 256  }
 0x168   : > { %836 = vsyncadd (%p626_p2), %s479_s5, 4294967040  ;;  %p23_p11 = scmp.ge.s32.totalorder %s904_s18, 4   ;;  %s1231_s12 = smov %s843_s13 }
 0x169   : > { %s1232_s13 = smov %s847_s14  ;;  %s1233_s14 = smov %s916_s21 }
 0x16a   : > { %s1234_s15 = smov %s904_s18  ;;  %25 = sbr.rel (!%p23_p11) target bundleno = 11 (0xb), region = 103 }
 0x16f   :  { %485 = vsyncpa [#allocation3], 1 }
 0x170   :  { %487 = vsyncpa [#allocation3 + $0x1], 1 }
 0x171   :  { %488 = vsyncpa [#allocation6], 1 }
 0x172   :  { %490 = vsyncpa [#allocation6 + $0x1], 1 }
 0x173   :  { %491 = vsyncpa [#allocation4], 1 }
 0x174   :  { %493 = vsyncpa [#allocation4 + $0x1], 1 }
 0x175   :  { %494 = vsyncpa [#allocation9], 1 }
 0x176   :  { %496 = vsyncpa [#allocation9 + $0x1], 1 }

</bundles_post_ra>
